<compile_context>
chip_gen: v6e
topology: v6e:2x2x1
jax: 0.10.0
libtpu: 0.0.40
codegen_flags: <defaults>
</compile_context>

<pallas_src>
import functools

import jax
import jax.numpy as jnp
from jax.experimental import pallas as pl
from jax.experimental.pallas import tpu as pltpu


_NEG_INF = -1e30              # finite mask: exp(_NEG_INF - m) underflows to exactly 0.0
_P = 128                      # lane-dense head width (logits | value | alp | ent | pad)
_K_TILE_MAX = 4096            # max feature (K) tile; beyond this we K-tile + accumulate
_B_TILE_MAX = 1024            # max batch tile rows
_VMEM_BUDGET = 24 * 1024 * 1024   # working-set budget used to derive the batch tile
_VMEM_LIMIT = 48 * 1024 * 1024    # explicit scoped-VMEM limit (safe on v5e/v6e/v7x)


def _round_up(n, m):
    return ((n + m - 1) // m) * m


def _cdiv(a, b):
    return (a + b - 1) // b


def _padded_k(d):
    """Feature dim padded so the K tile divides it."""
    return d if d <= _K_TILE_MAX else _round_up(d, _K_TILE_MAX)


def _tiling(b, dp):
    """(padded batch Bp, batch tile tB, feature tile tK) from a VMEM budget."""
    tk = dp if dp <= _K_TILE_MAX else _K_TILE_MAX
    # Per-step VMEM: x f32 (double-buffered) + out f32 (db) + acc scratch (+action),
    # plus W bf16 (db) + bias (db) as fixed cost.
    fixed = 2 * tk * _P * 2 + 2 * _P * 4
    per_row = 2 * tk * 4 + 2 * _P * 4 + _P * 4 + 2 * 4
    cap = (_VMEM_BUDGET - fixed) // per_row
    cap = max(8, min(_B_TILE_MAX, (cap // 8) * 8))
    bp8 = _round_up(b, 8)
    # >=2 batch tiles when possible so v7x's two TensorCores both get work.
    cap = min(cap, max(8, _round_up(_cdiv(bp8, 2), 8)))
    # Prefer a tile that divides the 8-padded batch exactly (no x batch pad).
    tb = 0
    for cand in range(cap, max(cap // 2 - 1, 7), -8):
        if bp8 % cand == 0:
            tb = cand
            break
    if tb == 0:
        tb = _round_up(_cdiv(bp8, _cdiv(bp8, cap)), 8)
    return _round_up(bp8, tb), tb, tk


def _maybe_pad(x, bp, dp):
    b, d = x.shape
    if bp != b or dp != d:
        x = jnp.pad(x, ((0, bp - b), (0, dp - d)))
    return x


# ----------------------------------------------------------------------------
# Kernels (one fused kernel per public method / path).
# Grid = (batch tiles "parallel", K tiles "arbitrary"); f32 accumulator scratch.
# x arrives as f32 and is cast to bf16 on-chip right before the MXU dot.
# ----------------------------------------------------------------------------
def _accumulate(x_ref, w_ref, acc_ref):
    @pl.when(pl.program_id(1) == 0)
    def _():
        acc_ref[...] = jnp.zeros_like(acc_ref)
    acc_ref[...] += jnp.dot(
        x_ref[...].astype(jnp.bfloat16), w_ref[...],
        preferred_element_type=jnp.float32)


def _head_kernel(x_ref, w_ref, b_ref, out_ref, acc_ref):
    _accumulate(x_ref, w_ref, acc_ref)

    @pl.when(pl.program_id(1) == pl.num_programs(1) - 1)
    def _():
        out_ref[...] = acc_ref[...] + b_ref[...]


def _evaluate_kernel(x_ref, w_ref, b_ref, act_ref, out_ref, acc_ref, *, num_actions):
    _accumulate(x_ref, w_ref, acc_ref)

    @pl.when(pl.program_id(1) == pl.num_programs(1) - 1)
    def _():
        head = acc_ref[...] + b_ref[...]                            # [tB, P] f32
        lane = jax.lax.broadcasted_iota(jnp.int32, head.shape, 1)   # [tB, P]
        logits = jnp.where(lane < num_actions, head, _NEG_INF)      # mask pad lanes

        m = jnp.max(logits, axis=1, keepdims=True)                  # [tB, 1]
        z = logits - m
        se = jnp.sum(jnp.exp(z), axis=1, keepdims=True)             # [tB, 1]
        log_probs = z - jnp.log(se)                                 # pad lanes ~ -1e30
        probs = jnp.exp(log_probs)                                  # EUP; pad lanes -> 0

        action = act_ref[...]                                       # [tB, 1] i32
        alp = jnp.sum(jnp.where(lane == action, log_probs, 0.0),
                      axis=1, keepdims=True)                        # [tB, 1]
        ent = -jnp.sum(probs * log_probs, axis=1, keepdims=True)    # [tB, 1]

        # Single lane-dense output slab: cols [0,A)=logits, A=value, A+1=alp,
        # A+2=per-row entropy (W/b are zero-padded so head already has zeros there).
        slab = head
        slab = jnp.where(lane == num_actions + 1, alp, slab)
        slab = jnp.where(lane == num_actions + 2, ent, slab)
        out_ref[...] = slab


def _act_kernel(x_ref, w_ref, b_ref, out_ref, acc_ref, *, num_actions):
    _accumulate(x_ref, w_ref, acc_ref)

    @pl.when(pl.program_id(1) == pl.num_programs(1) - 1)
    def _():
        head = acc_ref[...] + b_ref[...]
        lane = jax.lax.broadcasted_iota(jnp.int32, head.shape, 1)
        logits = jnp.where(lane < num_actions, head, _NEG_INF)
        m = jnp.max(logits, axis=1, keepdims=True)
        idx = jnp.where(logits == m, lane, head.shape[1])
        amin = jnp.min(idx, axis=1, keepdims=True)                  # [tB, 1] i32
        # TODO(synk): pack per-row argmax along lanes (sublane->lane transpose)
        # to cut writeback 128x; kept as an unmasked lane-dense i32 slab since
        # the x read (D*4 B/row) dominates for conv-flatten feature dims.
        out_ref[...] = jnp.broadcast_to(amin, head.shape).astype(jnp.int32)


# ----------------------------------------------------------------------------
# pallas_call wrappers (2-D grid: batch "parallel" x K "arbitrary")
# ----------------------------------------------------------------------------
def _specs(tb, tk, with_action):
    in_specs = [
        pl.BlockSpec((tb, tk), lambda i, k: (i, k)),    # x tile (f32)
        pl.BlockSpec((tk, _P), lambda i, k: (k, 0)),    # W K-slab (bf16)
        pl.BlockSpec((1, _P), lambda i, k: (0, 0)),     # bias (f32)
    ]
    if with_action:
        in_specs.append(pl.BlockSpec((tb, 1), lambda i, k: (i, 0)))
    out_spec = pl.BlockSpec((tb, _P), lambda i, k: (i, 0))
    return in_specs, out_spec


def _compiler_params():
    return pltpu.CompilerParams(
        dimension_semantics=("parallel", "arbitrary"),
        vmem_limit_bytes=_VMEM_LIMIT)


def _cost(bp, dp, transcendental_rows=0):
    return pl.CostEstimate(
        flops=2 * bp * dp * _P,
        transcendentals=transcendental_rows * _P,
        bytes_accessed=bp * dp * 4 + dp * _P * 2 + bp * _P * 4)


@functools.partial(jax.jit, static_argnames=("num_actions",))
def _forward_call(x_flat, w_bf, b_pad, *, num_actions):
    B = x_flat.shape[0]
    Dp = w_bf.shape[0]
    Bp, tB, tK = _tiling(B, Dp)
    x = _maybe_pad(x_flat, Bp, Dp)
    in_specs, out_spec = _specs(tB, tK, with_action=False)
    out = pl.pallas_call(
        _head_kernel,
        out_shape=jax.ShapeDtypeStruct((Bp, _P), jnp.float32),
        grid_spec=pltpu.PrefetchScalarGridSpec(
            num_scalar_prefetch=0, grid=(Bp // tB, Dp // tK),
            in_specs=in_specs, out_specs=out_spec,
            scratch_shapes=[pltpu.VMEM((tB, _P), jnp.float32)]),
        compiler_params=_compiler_params(),
        cost_estimate=_cost(Bp, Dp),
    )(x, w_bf, b_pad)
    logit = out[:B, :num_actions]
    value = out[:B, num_actions:num_actions + 1]
    return logit, value


@functools.partial(jax.jit, static_argnames=("num_actions",))
def _evaluate_call(x_flat, w_bf, b_pad, action, *, num_actions):
    B = x_flat.shape[0]
    Dp = w_bf.shape[0]
    Bp, tB, tK = _tiling(B, Dp)
    x = _maybe_pad(x_flat, Bp, Dp)
    act_p = action if Bp == B else jnp.pad(action, ((0, Bp - B), (0, 0)))
    in_specs, out_spec = _specs(tB, tK, with_action=True)
    out = pl.pallas_call(
        functools.partial(_evaluate_kernel, num_actions=num_actions),
        out_shape=jax.ShapeDtypeStruct((Bp, _P), jnp.float32),
        grid_spec=pltpu.PrefetchScalarGridSpec(
            num_scalar_prefetch=0, grid=(Bp // tB, Dp // tK),
            in_specs=in_specs, out_specs=out_spec,
            scratch_shapes=[pltpu.VMEM((tB, _P), jnp.float32)]),
        compiler_params=_compiler_params(),
        cost_estimate=_cost(Bp, Dp, transcendental_rows=2 * Bp),
    )(x, w_bf, b_pad, act_p)
    logit = out[:B, :num_actions]
    value = out[:B, num_actions:num_actions + 1]
    alp = out[:B, num_actions + 1:num_actions + 2]
    entropy = jnp.mean(out[:B, num_actions + 2])    # batch-mean outside kernel
    return logit, alp, value, entropy


@functools.partial(jax.jit, static_argnames=("num_actions",))
def _act_call(x_flat, w_bf, b_pad, *, num_actions):
    B = x_flat.shape[0]
    Dp = w_bf.shape[0]
    Bp, tB, tK = _tiling(B, Dp)
    x = _maybe_pad(x_flat, Bp, Dp)
    in_specs, out_spec = _specs(tB, tK, with_action=False)
    out = pl.pallas_call(
        functools.partial(_act_kernel, num_actions=num_actions),
        out_shape=jax.ShapeDtypeStruct((Bp, _P), jnp.int32),
        grid_spec=pltpu.PrefetchScalarGridSpec(
            num_scalar_prefetch=0, grid=(Bp // tB, Dp // tK),
            in_specs=in_specs, out_specs=out_spec,
            scratch_shapes=[pltpu.VMEM((tB, _P), jnp.float32)]),
        compiler_params=_compiler_params(),
        cost_estimate=_cost(Bp, Dp),
    )(x, w_bf, b_pad)
    return out[:B, 0]


# ----------------------------------------------------------------------------
# Module
# ----------------------------------------------------------------------------
class OnPolicyPallas:
    """Pallas port of OnPolicy. Base forward is abstract in PyTorch; we supply
    a deterministic linear policy/value head so act/evaluate_actions run.
    Note: x and W are bf16-rounded before the MXU (f32 accumulation + f32 bias);
    this is a fidelity choice vs. a pure f32 torch reference."""

    def __init__(self, in_dim, num_actions, key):
        assert num_actions + 3 <= _P, "pad width assumes <= 125 actions"
        k1, k2 = jax.random.split(key)
        self.num_actions = num_actions
        self.in_dim = in_dim
        dp = _padded_k(in_dim)   # pad K once at init so K tiles always divide it
        # Fused head: columns [0:A) -> policy logits, column A -> value.
        w = jax.random.normal(k1, (in_dim, num_actions + 1), jnp.float32) * 0.01
        b = jax.random.normal(k2, (1, num_actions + 1), jnp.float32) * 0.01
        # Lane-dense zero-padded parameter storage; bf16 weights for the MXU.
        self.w_bf = jnp.zeros((dp, _P), jnp.bfloat16).at[
            :in_dim, : num_actions + 1].set(w.astype(jnp.bfloat16))
        self.b_pad = jnp.zeros((1, _P), jnp.float32).at[:, : num_actions + 1].set(b)
        self.w = w   # f32 masters (reference / training)
        self.b = b

    @staticmethod
    def _flatten(x):
        # NCHW [B,C,H,W] -> [B, C*H*W] (torch flatten order); stays f32,
        # reshape is a metadata op (bf16 cast happens inside the kernel).
        return x.reshape(x.shape[0], -1).astype(jnp.float32)

    def forward(self, x):
        return _forward_call(self._flatten(x), self.w_bf, self.b_pad,
                             num_actions=self.num_actions)

    def act(self, x, deterministic=False, smart=False):
        if deterministic:
            return _act_call(self._flatten(x), self.w_bf, self.b_pad,
                             num_actions=self.num_actions)     # [B], like probs.max(1)[1]
        elif smart:
            d = 5  # matches the reference (no-op branch)
            return None
        else:
            # TODO(synk): probs.multinomial(num_samples=1) (stochastic categorical
            # sampling) not implemented in-kernel; deterministic path is the hot path.
            raise NotImplementedError("stochastic sampling not implemented")

    def evaluate_actions(self, x, action):
        action = jnp.asarray(action, jnp.int32).reshape(-1, 1)
        # Out-of-range actions would silently gather 0.0 in-kernel; clamp to the
        # valid range (torch's gather would raise instead).
        action = jnp.clip(action, 0, self.num_actions - 1)
        logit, alp, value, entropy = _evaluate_call(
            self._flatten(x), self.w_bf, self.b_pad, action,
            num_actions=self.num_actions)
        return logit, alp, value, entropy

    @staticmethod
    def calculate_conv_output(img_dim, out_channels, kernel_size, stride=1, padding=0):
        output_width = (img_dim[0] - kernel_size + 2 * padding) // stride + 1
        output_height = (img_dim[1] - kernel_size + 2 * padding) // stride + 1
        return [out_channels, output_width, output_height]


# ----------------------------------------------------------------------------
# Main
# ----------------------------------------------------------------------------
if __name__ == "__main__":
    key = jax.random.PRNGKey(0)
    kx, ka, kp = jax.random.split(key, 3)

    B, C, H, W = 2, 4, 16, 16
    A = 8
    x = jax.random.normal(kx, (B, C, H, W), jnp.float32)
    action = jax.random.randint(ka, (B, 1), 0, A, jnp.int32)

    model = OnPolicyPallas(in_dim=C * H * W, num_actions=A, key=kp)

    logit, value = model.forward(x)
    det_action = model.act(x, deterministic=True)
    logit2, alp, value2, entropy = model.evaluate_actions(x, action)
    jax.block_until_ready((logit, value, det_action, logit2, alp, value2, entropy))

    # Reference in plain JAX using the same bf16-rounded operands the MXU sees
    # (bf16 inputs, f32 accumulation, f32 bias).
    D = C * H * W
    x_flat = x.reshape(B, -1)
    xq = x_flat.astype(jnp.bfloat16).astype(jnp.float32)
    wq = model.w_bf.astype(jnp.float32)[:D, : A + 1]
    ref_out = jnp.dot(xq, wq, precision=jax.lax.Precision.HIGHEST) + model.b
    ref_logit, ref_value = ref_out[:, :A], ref_out[:, A:]
    ref_logp = jax.nn.log_softmax(ref_logit, axis=1)
    ref_p = jax.nn.softmax(ref_logit, axis=1)
    ref_alp = jnp.take_along_axis(ref_logp, action, axis=1)
    ref_ent = -(ref_p * ref_logp).sum(1).mean()
    ref_act = jnp.argmax(ref_logit, axis=1)

    assert jnp.allclose(logit, ref_logit, atol=1e-4)
    assert jnp.allclose(value, ref_value, atol=1e-4)
    assert jnp.allclose(logit2, ref_logit, atol=1e-4)
    assert jnp.allclose(value2, ref_value, atol=1e-4)
    assert jnp.allclose(alp, ref_alp, atol=1e-4)
    assert jnp.allclose(entropy, ref_ent, atol=1e-4)
    assert jnp.array_equal(det_action, ref_act)

    print("KERNEL_OK")
</pallas_src>

<mosaic_0001>
module attributes {stable_mosaic.version = 11 : i64} {
  func.func @_head_kernel(%arg0: i32, %arg1: i32, %arg2: memref<8x1024xf32, #tpu.memory_space<vmem>>, %arg3: memref<1024x128xbf16, #tpu.memory_space<vmem>>, %arg4: memref<1x128xf32, #tpu.memory_space<vmem>>, %arg5: memref<8x128xf32, #tpu.memory_space<vmem>>, %arg6: memref<8x128xf32, #tpu.memory_space<vmem>>) attributes {dimension_semantics = [#tpu.dimension_semantics<parallel>, #tpu.dimension_semantics<arbitrary>], iteration_bounds = array<i64: 1, 1>, scalar_prefetch = 0 : i64, scratch_operands = 1 : i64, tpu.core_type = #tpu.core_type<tc>, window_params = [{transform_indices = @transform_0, window_bounds = array<i64: 8, 1024>}, {transform_indices = @transform_1, window_bounds = array<i64: 1024, 128>}, {pipeline_mode = #tpu.pipeline_mode<synchronous>, transform_indices = @transform_2, window_bounds = array<i64: 1, 128>}, {transform_indices = @transform_3, window_bounds = array<i64: 8, 128>}]} {
    %c0_i32 = arith.constant 0 : i32
    %0 = arith.cmpi eq, %arg1, %c0_i32 : i32
    %1 = arith.extui %0 : i1 to i32
    %c0_i32_0 = arith.constant 0 : i32
    %2 = arith.cmpi ne, %1, %c0_i32_0 : i32
    scf.if %2 {
      %cst_10 = arith.constant 0.000000e+00 : f32
      %13 = vector.broadcast %cst_10 : f32 to vector<8x128xf32>
      %c0_11 = arith.constant 0 : index
      %c0_12 = arith.constant 0 : index
      %14 = vector.load %arg6[%c0_11, %c0_12] : memref<8x128xf32, #tpu.memory_space<vmem>>, vector<8x128xf32>
      tpu.vector_store %arg6[%c0_11, %c0_12], %13 {strides = array<i32>} : memref<8x128xf32, #tpu.memory_space<vmem>>, vector<8x128xf32>,
    } else {
    }
    %c0 = arith.constant 0 : index
    %c0_1 = arith.constant 0 : index
    %3 = vector.load %arg6[%c0, %c0_1] : memref<8x128xf32, #tpu.memory_space<vmem>>, vector<8x128xf32>
    %c0_2 = arith.constant 0 : index
    %c0_3 = arith.constant 0 : index
    %4 = vector.load %arg2[%c0_2, %c0_3] : memref<8x1024xf32, #tpu.memory_space<vmem>>, vector<8x1024xf32>
    %5 = arith.truncf %4 : vector<8x1024xf32> to vector<8x1024xbf16>
    %c0_4 = arith.constant 0 : index
    %c0_5 = arith.constant 0 : index
    %6 = vector.load %arg3[%c0_4, %c0_5] : memref<1024x128xbf16, #tpu.memory_space<vmem>>, vector<1024x128xbf16>
    %cst = arith.constant dense<0.000000e+00> : vector<8x128xf32>
    %7 = tpu.matmul %5, %6, %cst {dimension_numbers = #tpu.dot_dimension_numbers<[1], [0], [0], [1], [0, 0, 1, 1], [], []>} : vector<8x1024xbf16>, vector<1024x128xbf16>, vector<8x128xf32> -> vector<8x128xf32>
    %8 = arith.addf %3, %7 : vector<8x128xf32>
    %c0_6 = arith.constant 0 : index
    %c0_7 = arith.constant 0 : index
    %9 = vector.load %arg6[%c0_6, %c0_7] : memref<8x128xf32, #tpu.memory_space<vmem>>, vector<8x128xf32>
    tpu.vector_store %arg6[%c0_6, %c0_7], %8 {strides = array<i32>} : memref<8x128xf32, #tpu.memory_space<vmem>>, vector<8x128xf32>,
    %c0_i32_8 = arith.constant 0 : i32
    %10 = arith.cmpi eq, %arg1, %c0_i32_8 : i32
    %11 = arith.extui %10 : i1 to i32
    %c0_i32_9 = arith.constant 0 : i32
    %12 = arith.cmpi ne, %11, %c0_i32_9 : i32
    scf.if %12 {
      %c0_10 = arith.constant 0 : index
      %c0_11 = arith.constant 0 : index
      %13 = vector.load %arg6[%c0_10, %c0_11] : memref<8x128xf32, #tpu.memory_space<vmem>>, vector<8x128xf32>
      %c0_12 = arith.constant 0 : index
      %c0_13 = arith.constant 0 : index
      %14 = vector.load %arg4[%c0_12, %c0_13] : memref<1x128xf32, #tpu.memory_space<vmem>>, vector<1x128xf32>
      %15 = vector.broadcast %14 : vector<1x128xf32> to vector<8x128xf32>
      %16 = arith.addf %13, %15 : vector<8x128xf32>
      %c0_14 = arith.constant 0 : index
      %c0_15 = arith.constant 0 : index
      %17 = vector.load %arg5[%c0_14, %c0_15] : memref<8x128xf32, #tpu.memory_space<vmem>>, vector<8x128xf32>
      tpu.vector_store %arg5[%c0_14, %c0_15], %16 {strides = array<i32>} : memref<8x128xf32, #tpu.memory_space<vmem>>, vector<8x128xf32>,
    } else {
    }
    return
  }
  func.func @transform_0(%arg0: i32, %arg1: i32) -> (i32, i32) {
    %c0_i32 = arith.constant 0 : i32
    return %arg0, %arg1 : i32, i32
  }
  func.func @transform_1(%arg0: i32, %arg1: i32) -> (i32, i32) {
    %c0_i32 = arith.constant 0 : i32
    %c0_i32_0 = arith.constant 0 : i32
    return %arg1, %c0_i32 : i32, i32
  }
  func.func @transform_2(%arg0: i32, %arg1: i32) -> (i32, i32) {
    %c0_i32 = arith.constant 0 : i32
    %c0_i32_0 = arith.constant 0 : i32
    %c0_i32_1 = arith.constant 0 : i32
    return %c0_i32, %c0_i32_0 : i32, i32
  }
  func.func @transform_3(%arg0: i32, %arg1: i32) -> (i32, i32) {
    %c0_i32 = arith.constant 0 : i32
    %c0_i32_0 = arith.constant 0 : i32
    return %arg0, %c0_i32 : i32, i32
  }
}

</mosaic_0001>

<bundles_post_ra>
// kernel: _forward_call.1
= control target key start
LH: loop header
LB: loop body
LE: loop exit
PB: predicated region body
PF: predicated region fallthrough
CT: control target
= control target key end

     0   :  { %8 = vsyncpa [#allocation4], 0  ;;  %s985_s12 = smov [#allocation3]   ;;  %s1041_s0 = inlined_call_operand.vmem [shape: f32[8,1024], index: 0, kind: input, shape index: {}]   ;;  %s1042_s1 = inlined_call_operand.hbm [shape: bf16[1024,128], index: 1, kind: input, shape index: {}]   ;;  %s1043_s2 = inlined_call_operand.vmem [shape: f32[1,128], index: 2, kind: input, shape index: {}]   ;;  %s1044_s3 = inlined_call_operand.vmem [shape: f32[8,128], index: 3, kind: output, shape index: {}]  }
   0x1   :  { %s16_s13 = sshll.u32 %s985_s12, 4  ;;  %s17_s13 = int_to_ptr.vmem [resolvable:$true] %s16_s13 }
   0x2   :  { %s971_s14 = scalar_lea.vmem %s17_s13, 8192  ;;  %p976_p1 = scmp.lt.s32.totalorder %s17_s13, %s17_s13 }
   0x3   :  { %p972_p0 = scmp.ne.s32.totalorder %s17_s13, %s971_s14  ;;  %p977_p2 = scmp.lt.s32.totalorder %s971_s14, %s971_s14 }
   0x5   :  { %p978_p3 = por %p977_p2, %p976_p1 }
   0x7   :  { %p979_p4 = pnand %p978_p3, %p972_p0 }
   0x9   :  { %982 = shalt.err (!%p979_p4)
}
   0xa   :  { %s986_s15 = smov 64   ;;  %s987_s16 = smov 4  }
   0xb   :  { %22 = dma.hbm_to_vmem [thread:$0]  %s1042_s1, 8192, %s17_s13, [#allocation4], %s986_s15, %s986_s15, %s987_s16  }
   0xc   :  { %983 = dma.done.wait [#allocation4], 8192  }
   0xd   :  { %984 = vsyncadd [#allocation4], 4294959104  ;;  %v899_v0 = vld [vmem:[#allocation3 + $0x78] sm:$0xff]   ;;  %v903_v4 = vld [vmem:[#allocation3 + $0x70] sm:$0xff]  }
   0xe   :  { %v900_v1 = vld [vmem:[#allocation3 + $0xf8] sm:$0xff]   ;;  %808 = vmatprep.subr.bf16.mxu0 %v899_v0  ;;  %v904_v5 = vld [vmem:[#allocation3 + $0xf0] sm:$0xff]   ;;  %v907_v8 = vld [vmem:[#allocation3 + $0x68] sm:$0xff]  }
   0xf   :  { %v901_v2 = vld [vmem:[#allocation3 + $0x38] sm:$0xff]   ;;  %830 = vmatprep.subr.bf16.mxu1 %v900_v1  ;;  %v905_v6 = vld [vmem:[#allocation3 + $0x30] sm:$0xff]   ;;  %v908_v9 = vld [vmem:[#allocation3 + $0xe8] sm:$0xff]  }
  0x10   :  { %v902_v3 = vld [vmem:[#allocation3 + $0xb8] sm:$0xff]   ;;  %809 = vmatpush3.bf16.msra.mxu0 %v901_v2  ;;  %v906_v7 = vld [vmem:[#allocation3 + $0xb0] sm:$0xff]   ;;  %v909_v10 = vld [vmem:[#allocation3 + $0x28] sm:$0xff]  }
  0x11   :  { %831 = vmatpush3.bf16.msra.mxu1 %v902_v3  ;;  %810 = vmatprep.subr.bf16.mxu0 %v903_v4  ;;  %v910_v11 = vld [vmem:[#allocation3 + $0xa8] sm:$0xff]   ;;  %v911_v12 = vld [vmem:[#allocation3 + $0x60] sm:$0xff]   ;;  %v915_v16 = vld [vmem:[#allocation3 + $0x58] sm:$0xff]  }
  0x12   :  { %832 = vmatprep.subr.bf16.mxu1 %v904_v5  ;;  %v912_v13 = vld [vmem:[#allocation3 + $0xe0] sm:$0xff]   ;;  %v916_v17 = vld [vmem:[#allocation3 + $0xd8] sm:$0xff]   ;;  %v919_v20 = vld [vmem:[#allocation3 + $0x50] sm:$0xff]  }
  0x13   :  { %v913_v14 = vld [vmem:[#allocation3 + $0x20] sm:$0xff]   ;;  %v917_v18 = vld [vmem:[#allocation3 + $0x18] sm:$0xff]   ;;  %v920_v21 = vld [vmem:[#allocation3 + $0xd0] sm:$0xff]  }
  0x14   :  { %811 = vmatpush3.bf16.msra.mxu0 %v905_v6  ;;  %v914_v15 = vld [vmem:[#allocation3 + $0xa0] sm:$0xff]   ;;  %v918_v19 = vld [vmem:[#allocation3 + $0x98] sm:$0xff]   ;;  %v921_v22 = vld [vmem:[#allocation3 + $0x10] sm:$0xff]  }
  0x15   :  { %833 = vmatpush3.bf16.msra.mxu1 %v906_v7  ;;  %812 = vmatprep.subr.bf16.mxu0 %v907_v8  ;;  %v922_v23 = vld [vmem:[#allocation3 + $0x90] sm:$0xff]   ;;  %v923_v24 = vld [vmem:[#allocation3 + $0x48] sm:$0xff]   ;;  %v927_v28 = vld [vmem:[#allocation3 + $0x40] sm:$0xff]  }
  0x16   :  { %834 = vmatprep.subr.bf16.mxu1 %v908_v9  ;;  %v924_v25 = vld [vmem:[#allocation3 + $0xc8] sm:$0xff]   ;;  %v928_v29 = vld [vmem:[#allocation3 + $0xc0] sm:$0xff]   ;;  %v38_v33 = vld [vmem:[%s1041_s0 + $0x18] sm:$0xff] }
  0x17   :  { %v925_v26 = vld [vmem:[#allocation3 + $0x8] sm:$0xff]   ;;  %v929_v30 = vld [vmem:[#allocation3] sm:$0xff]   ;;  %v46_v36 = vpack.c.bf16 %v38_v33, %v38_v33  ;;  %v37_v38 = vld [vmem:[%s1041_s0 + $0x10] sm:$0xff] }
  0x18   :  { %813 = vmatpush3.bf16.msra.mxu0 %v909_v10  ;;  %v926_v27 = vld [vmem:[#allocation3 + $0x88] sm:$0xff]   ;;  %v930_v31 = vld [vmem:[#allocation3 + $0x80] sm:$0xff]   ;;  %v45_v39 = vpack.c.bf16 %v37_v38, %v37_v38  ;;  %v931_v40 = vld [vmem:[#allocation3 + $0x178] sm:$0xff]  }
  0x19   :  { %835 = vmatpush3.bf16.msra.mxu1 %v910_v11  ;;  %814 = vmatprep.subr.bf16.mxu0 %v911_v12  ;;  %v36_v32 = vld [vmem:[%s1041_s0 + $0x8] sm:$0xff]  ;;  %v35_v34 = vld [vmem:[%s1041_s0] sm:$0xff]  ;;  %v932_v41 = vld [vmem:[#allocation3 + $0x1f8] sm:$0xff]  }
  0x1a   :  { %836 = vmatprep.subr.bf16.mxu1 %v912_v13  ;;  %v44_v35 = vpack.c.bf16 %v36_v32, %v36_v32  ;;  %v43_v37 = vpack.c.bf16 %v35_v34, %v35_v34  ;;  %635 = vmatprep.mubr.bf16.mxu1 %v46_v36  ;;  %v933_v42 = vld [vmem:[#allocation3 + $0x138] sm:$0xff]   ;;  %v935_v44 = vld [vmem:[#allocation3 + $0x170] sm:$0xff]   ;;  %v939_v48 = vld [vmem:[#allocation3 + $0x168] sm:$0xff]  }
  0x1b   :  { %v934_v43 = vld [vmem:[#allocation3 + $0x1b8] sm:$0xff]   ;;  %v936_v45 = vld [vmem:[#allocation3 + $0x1f0] sm:$0xff]   ;;  %v940_v49 = vld [vmem:[#allocation3 + $0x1e8] sm:$0xff]  }
  0x1c   :  { %815 = vmatpush3.bf16.msra.mxu0 %v913_v14  ;;  %595 = vmatprep.mubr.bf16.mxu0 %v44_v35  ;;  %v937_v46 = vld [vmem:[#allocation3 + $0x130] sm:$0xff]   ;;  %v941_v50 = vld [vmem:[#allocation3 + $0x128] sm:$0xff]   ;;  %v943_v52 = vld [vmem:[#allocation3 + $0x160] sm:$0xff]  }
  0x1d   :  { %837 = vmatpush3.bf16.msra.mxu1 %v914_v15  ;;  %816 = vmatprep.subr.bf16.mxu0 %v915_v16  ;;  %v938_v47 = vld [vmem:[#allocation3 + $0x1b0] sm:$0xff]   ;;  %v942_v51 = vld [vmem:[#allocation3 + $0x1a8] sm:$0xff]   ;;  %v944_v53 = vld [vmem:[#allocation3 + $0x1e0] sm:$0xff]  }
  0x1e   :  { %838 = vmatprep.subr.bf16.mxu1 %v916_v17  ;;  %v945_v54 = vld [vmem:[#allocation3 + $0x120] sm:$0xff]   ;;  %v947_v56 = vld [vmem:[#allocation3 + $0x158] sm:$0xff]   ;;  %v951_v60 = vld [vmem:[#allocation3 + $0x150] sm:$0xff]  }
  0x1f   :  { %v946_v55 = vld [vmem:[#allocation3 + $0x1a0] sm:$0xff]   ;;  %v948_v57 = vld [vmem:[#allocation3 + $0x1d8] sm:$0xff]   ;;  %v952_v61 = vld [vmem:[#allocation3 + $0x1d0] sm:$0xff]  }
  0x20   :  { %817 = vmatpush3.bf16.msra.mxu0 %v917_v18  ;;  %v949_v58 = vld [vmem:[#allocation3 + $0x118] sm:$0xff]   ;;  %v953_v62 = vld [vmem:[#allocation3 + $0x110] sm:$0xff]   ;;  %v955_v0 = vld [vmem:[#allocation3 + $0x148] sm:$0xff]  }
  0x21   :  { %839 = vmatpush3.bf16.msra.mxu1 %v918_v19  ;;  %818 = vmatprep.subr.bf16.mxu0 %v919_v20  ;;  %v950_v59 = vld [vmem:[#allocation3 + $0x198] sm:$0xff]   ;;  %v954_v63 = vld [vmem:[#allocation3 + $0x190] sm:$0xff]   ;;  %v956_v1 = vld [vmem:[#allocation3 + $0x1c8] sm:$0xff]  }
  0x22   :  { %840 = vmatprep.subr.bf16.mxu1 %v920_v21  ;;  %v957_v2 = vld [vmem:[#allocation3 + $0x108] sm:$0xff]   ;;  %v959_v4 = vld [vmem:[#allocation3 + $0x140] sm:$0xff]   ;;  %v42_v9 = vld [vmem:[%s1041_s0 + $0x38] sm:$0xff] }
  0x23   :  { %v958_v3 = vld [vmem:[#allocation3 + $0x188] sm:$0xff]   ;;  %v960_v5 = vld [vmem:[#allocation3 + $0x1c0] sm:$0xff]   ;;  %v50_v11 = vpack.c.bf16 %v42_v9, %v42_v9  ;;  %v41_v13 = vld [vmem:[%s1041_s0 + $0x30] sm:$0xff] }
  0x24   :  { %819 = vmatpush3.bf16.msra.mxu0 %v921_v22  ;;  %v961_v6 = vld [vmem:[#allocation3 + $0x100] sm:$0xff]   ;;  %v40_v8 = vld [vmem:[%s1041_s0 + $0x28] sm:$0xff]  ;;  %v49_v15 = vpack.c.bf16 %v41_v13, %v41_v13 }
  0x25   :  { %841 = vmatpush3.bf16.msra.mxu1 %v922_v23  ;;  %820 = vmatprep.subr.bf16.mxu0 %v923_v24  ;;  %v962_v7 = vld [vmem:[#allocation3 + $0x180] sm:$0xff]   ;;  %v48_v10 = vpack.c.bf16 %v40_v8, %v40_v8 }
  0x26   :  { %842 = vmatprep.subr.bf16.mxu1 %v924_v25  ;;  %v39_v12 = vld [vmem:[%s1041_s0 + $0x20] sm:$0xff] }
  0x27   :  { %v47_v14 = vpack.c.bf16 %v39_v12, %v39_v12  ;;  %v807_v36 = vld [vmem:[%s1043_s2] ss:$0 sm:$0xff] }
  0x28   :  { %821 = vmatpush3.bf16.msra.mxu0 %v925_v26 }
  0x29   :  { %843 = vmatpush3.bf16.msra.mxu1 %v926_v27  ;;  %822 = vmatprep.subr.bf16.mxu0 %v927_v28 }
  0x2a   :  { %844 = vmatprep.subr.bf16.mxu1 %v928_v29 }
  0x2c   :  { %823 = vmatpush3.bf16.msra.mxu0 %v929_v30 }
  0x2d   :  { %845 = vmatpush3.bf16.msra.mxu1 %v930_v31  ;;  %852 = vmatprep.subr.bf16.mxu0 %v931_v40 }
  0x2e   :  { %874 = vmatprep.subr.bf16.mxu1 %v932_v41 }
  0x2f   :  { %596 = vmatmul.mubr.bf16.vlgmr.msra.gmra.mxu0 %v43_v37 }
  0x30   :  { %636 = vmatmul.mubr.bf16.vlgmr.msra.gmra.mxu1 %v45_v39  ;;  %853 = vmatpush3.bf16.msra.mxu0 %v933_v42 }
  0x31   :  { %875 = vmatpush3.bf16.msra.mxu1 %v934_v43  ;;  %854 = vmatprep.subr.bf16.mxu0 %v935_v44 }
  0x32   :  { %876 = vmatprep.subr.bf16.mxu1 %v936_v45  ;;  %675 = vmatprep.mubr.bf16.mxu0 %v48_v10 }
  0x33   :  { %715 = vmatprep.mubr.bf16.mxu1 %v50_v11 }
  0x34   :  { %855 = vmatpush3.bf16.msra.mxu0 %v937_v46 }
  0x35   :  { %877 = vmatpush3.bf16.msra.mxu1 %v938_v47  ;;  %856 = vmatprep.subr.bf16.mxu0 %v939_v48 }
  0x36   :  { %878 = vmatprep.subr.bf16.mxu1 %v940_v49 }
  0x38   :  { %857 = vmatpush3.bf16.msra.mxu0 %v941_v50 }
  0x39   :  { %879 = vmatpush3.bf16.msra.mxu1 %v942_v51  ;;  %858 = vmatprep.subr.bf16.mxu0 %v943_v52 }
  0x3a   :  { %880 = vmatprep.subr.bf16.mxu1 %v944_v53 }
  0x3c   :  { %859 = vmatpush3.bf16.msra.mxu0 %v945_v54 }
  0x3d   :  { %881 = vmatpush3.bf16.msra.mxu1 %v946_v55  ;;  %860 = vmatprep.subr.bf16.mxu0 %v947_v56 }
  0x3e   :  { %882 = vmatprep.subr.bf16.mxu1 %v948_v57 }
  0x40   :  { %861 = vmatpush3.bf16.msra.mxu0 %v949_v58 }
  0x41   :  { %883 = vmatpush3.bf16.msra.mxu1 %v950_v59  ;;  %862 = vmatprep.subr.bf16.mxu0 %v951_v60 }
  0x42   :  { %884 = vmatprep.subr.bf16.mxu1 %v952_v61 }
  0x44   :  { %863 = vmatpush3.bf16.msra.mxu0 %v953_v62 }
  0x45   :  { %885 = vmatpush3.bf16.msra.mxu1 %v954_v63  ;;  %864 = vmatprep.subr.bf16.mxu0 %v955_v0 }
  0x46   :  { %886 = vmatprep.subr.bf16.mxu1 %v956_v1 }
  0x48   :  { %865 = vmatpush3.bf16.msra.mxu0 %v957_v2 }
  0x49   :  { %887 = vmatpush3.bf16.msra.mxu1 %v958_v3  ;;  %866 = vmatprep.subr.bf16.mxu0 %v959_v4 }
  0x4a   :  { %888 = vmatprep.subr.bf16.mxu1 %v960_v5 }
  0x4c   :  { %867 = vmatpush3.bf16.msra.mxu0 %v961_v6 }
  0x4d   :  { %889 = vmatpush3.bf16.msra.mxu1 %v962_v7 }
  0x4f   :  { %676 = vmatmul.mubr.bf16.vlgmr.msra.gmra.mxu0 %v47_v14 }
  0x50   :  { %716 = vmatmul.mubr.bf16.vlgmr.msra.gmra.mxu1 %v49_v15 }
  0xef   :  { %v824_v16 = vpop.f32.mrf.mxu0 }
  0xf0   :  { %v846_v17 = vpop.f32.mrf.mxu1 }
  0xf1   :  { %v825_v18 = vpop.f32.mrf.mxu0 }
  0xf2   :  { %v847_v19 = vpop.f32.mrf.mxu1  ;;  %v826_v24 = vadd.f32 %v825_v18, %v824_v16 }
  0xf3   :  { %v827_v20 = vpop.f32.mrf.mxu0  ;;  %v848_v25 = vadd.f32 %v847_v19, %v846_v17 }
  0xf4   :  { %v849_v21 = vpop.f32.mrf.mxu1 }
  0xf5   :  { %v828_v22 = vpop.f32.mrf.mxu0  ;;  %v638_v29 = vadd.f32 %v848_v25, %v826_v24 }
  0xf6   :  { %v850_v23 = vpop.f32.mrf.mxu1 }
 0x10f   :  { %v868_v26 = vpop.f32.mrf.mxu0 }
 0x110   :  { %v890_v27 = vpop.f32.mrf.mxu1 }
 0x111   :  { %v869_v28 = vpop.f32.mrf.mxu0 }
 0x112   :  { %v870_v30 = vadd.f32 %v869_v28, %v868_v26  ;;  %v891_v31 = vpop.f32.mrf.mxu1 }
 0x113   :  { %v871_v32 = vpop.f32.mrf.mxu0  ;;  %v892_v34 = vadd.f32 %v891_v31, %v890_v27 }
 0x114   :  { %v678_v33 = vadd.f32 %v870_v30, %v638_v29  ;;  %v893_v35 = vpop.f32.mrf.mxu1 }
 0x115   :  { %v872_v37 = vpop.f32.mrf.mxu0 }
 0x116   :  { %v718_v38 = vadd.f32 %v892_v34, %v678_v33  ;;  %v894_v39 = vpop.f32.mrf.mxu1 }
 0x118   :  { %v736_v40 = vadd.f32 %v807_v36, %v718_v38 }
 0x11a   :  { %737 = vst [vmem:[%s1044_s3] sm:$0xff] %v736_v40 }
 0x11b   :  { %742 = vsyncpa [#allocation4], 1 }

</bundles_post_ra>
